<compile_context>
chip_gen: v5e
topology: v5e:2x2
jax: 0.10.0
libtpu: 0.0.40
codegen_flags: <defaults>
</compile_context>

<pallas_src>
import numpy as np
import jax
import jax.numpy as jnp
from jax import lax
from jax.experimental import pallas as pl
from jax.experimental.pallas import tpu as pltpu


# ----------------------------------------------------------------------------
# Pallas kernel: one-hot gather + two-layer MLP with SiLU, single invocation
# ----------------------------------------------------------------------------
def _time_embed_kernel(ts_ref, pe_ref, w1_ref, w2_ref, b_ref, o_ref):
    # ts_ref : [B, 1] int32 timesteps.
    # pe_ref : [L, D]  full positional-encoding table (VMEM resident).
    # w1_ref / w2_ref : [D, D] PyTorch-layout [out, in] weights.
    # b_ref  : [2, D]  stacked (b1, b2).
    # o_ref  : [B, D]  output slab.
    B = ts_ref.shape[0]
    L = pe_ref.shape[0]

    # --- Gather pe[timesteps] as a one-hot matmul on the MXU -----------------
    # onehot[b, l] = (l == timesteps[b]); x = onehot @ pe  -> [B, D]
    lane_ids = lax.broadcasted_iota(jnp.int32, (B, L), 1)
    onehot = (lane_ids == ts_ref[...]).astype(jnp.float32)
    x = jnp.dot(onehot, pe_ref[...], preferred_element_type=jnp.float32)

    # --- Linear 1: x @ W1^T + b1 (transposed contraction, native MXU) --------
    h = lax.dot_general(x, w1_ref[...], (((1,), (1,)), ((), ())),
                        preferred_element_type=jnp.float32)
    h = h + b_ref[0:1, :]

    # --- SiLU (f32, sigmoid goes to the EUP) ----------------------------------
    h = h * jax.nn.sigmoid(h)

    # --- Linear 2: h @ W2^T + b2 ----------------------------------------------
    y = lax.dot_general(h, w2_ref[...], (((1,), (1,)), ((), ())),
                        preferred_element_type=jnp.float32)
    y = y + b_ref[1:2, :]

    o_ref[...] = y.astype(o_ref.dtype)


def time_embed_mlp(timesteps, pe_table, w1, w2, biases):
    """timesteps: [B] int32; pe_table: [L, D] f32; w1/w2: [D, D] ([out,in]);
    biases: [2, D]. Returns [B, D] f32."""
    B = timesteps.shape[0]
    L, D = pe_table.shape
    ts2d = timesteps.astype(jnp.int32).reshape(B, 1)

    return pl.pallas_call(
        _time_embed_kernel,
        out_shape=jax.ShapeDtypeStruct((B, D), jnp.float32),
        grid=(1,),
        in_specs=[
            pl.BlockSpec((B, 1), lambda i: (0, 0)),   # timesteps
            pl.BlockSpec((L, D), lambda i: (0, 0)),   # full PE table
            pl.BlockSpec((D, D), lambda i: (0, 0)),   # W1 ([out, in])
            pl.BlockSpec((D, D), lambda i: (0, 0)),   # W2 ([out, in])
            pl.BlockSpec((2, D), lambda i: (0, 0)),   # stacked biases
        ],
        out_specs=pl.BlockSpec((B, D), lambda i: (0, 0)),
        compiler_params=pltpu.CompilerParams(
            dimension_semantics=("arbitrary",),
        ),
    )(ts2d, pe_table, w1, w2, biases)


# ----------------------------------------------------------------------------
# Module-level wrapper (parameters + positional-encoding table + glue)
# ----------------------------------------------------------------------------
def make_positional_encoding(max_len, d_model):
    """Standard sinusoidal PE as a [max_len, d_model] slab (== PyTorch pe[:, 0, :])."""
    position = np.arange(max_len, dtype=np.float32)[:, None]            # [L, 1]
    div_term = np.exp(np.arange(0, d_model, 2, dtype=np.float32)
                      * (-np.log(10000.0) / d_model))                    # [D/2]
    pe = np.zeros((max_len, d_model), dtype=np.float32)
    pe[:, 0::2] = np.sin(position * div_term)
    pe[:, 1::2] = np.cos(position * div_term)
    return jnp.asarray(pe)                                               # [L, D]


def init_params(key, latent_dim):
    """Linear(D,D) x2 params, PyTorch-style [out,in] weights; biases pre-stacked."""
    k1, k2, k3, k4 = jax.random.split(key, 4)
    bound = 1.0 / np.sqrt(latent_dim)
    w1 = jax.random.uniform(k1, (latent_dim, latent_dim), jnp.float32, -bound, bound)
    b1 = jax.random.uniform(k2, (latent_dim,), jnp.float32, -bound, bound)
    w2 = jax.random.uniform(k3, (latent_dim, latent_dim), jnp.float32, -bound, bound)
    b2 = jax.random.uniform(k4, (latent_dim,), jnp.float32, -bound, bound)
    biases = jnp.stack([b1, b2], axis=0)                                 # [2, D] (once, at init)
    return w1, w2, biases, b1, b2


def timestep_embedder_forward(timesteps, pe_table, w1, w2, biases):
    """Full TimestepEmbedder.forward. Returns [1, B, latent_dim]."""
    # NOTE: out-of-range timesteps produce a zero pe row (one-hot misses) rather
    # than raising as PyTorch indexing would.
    B = timesteps.shape[0]
    D = pe_table.shape[-1]
    y = time_embed_mlp(timesteps.astype(jnp.int32), pe_table, w1, w2, biases)  # [B, D]
    # permute(1,0,2) of [B,1,D] is bit-identical to a metadata-only reshape.
    return y.reshape(1, B, D)


# ----------------------------------------------------------------------------
# Demo / self-test
# ----------------------------------------------------------------------------
if __name__ == "__main__":
    latent_dim = 32
    max_len = 128
    batch = 2

    key = jax.random.PRNGKey(0)
    k_param, k_ts = jax.random.split(key)

    pe_table = make_positional_encoding(max_len, latent_dim)     # [128, 32]
    w1, w2, biases, b1, b2 = init_params(k_param, latent_dim)
    timesteps = jax.random.randint(k_ts, (batch,), 0, max_len).astype(jnp.int32)

    fwd = jax.jit(timestep_embedder_forward)
    out = fwd(timesteps, pe_table, w1, w2, biases)
    out = jax.block_until_ready(out)

    # Pure-JAX reference for sanity.
    x_ref = pe_table[timesteps]                                  # [B, D]
    h_ref = x_ref @ w1.T + b1
    h_ref = h_ref * jax.nn.sigmoid(h_ref)
    y_ref = h_ref @ w2.T + b2
    ref = y_ref.reshape(1, batch, latent_dim)

    assert out.shape == (1, batch, latent_dim), out.shape
    np.testing.assert_allclose(np.asarray(out), np.asarray(ref), rtol=1e-5, atol=1e-5)
    print("KERNEL_OK")
</pallas_src>

<mosaic_0001>
module attributes {stable_mosaic.version = 11 : i64} {
  func.func @_time_embed_kernel(%arg0: i32, %arg1: memref<2x1xi32, #tpu.memory_space<vmem>>, %arg2: memref<128x32xf32, #tpu.memory_space<vmem>>, %arg3: memref<32x32xf32, #tpu.memory_space<vmem>>, %arg4: memref<32x32xf32, #tpu.memory_space<vmem>>, %arg5: memref<2x32xf32, #tpu.memory_space<vmem>>, %arg6: memref<2x32xf32, #tpu.memory_space<vmem>>) attributes {dimension_semantics = [#tpu.dimension_semantics<arbitrary>], iteration_bounds = array<i64: 1>, scalar_prefetch = 0 : i64, scratch_operands = 0 : i64, tpu.core_type = #tpu.core_type<tc>, window_params = [{pipeline_mode = #tpu.pipeline_mode<synchronous>, transform_indices = @transform_0, window_bounds = array<i64: 2, 1>}, {pipeline_mode = #tpu.pipeline_mode<synchronous>, transform_indices = @transform_1, window_bounds = array<i64: 128, 32>}, {pipeline_mode = #tpu.pipeline_mode<synchronous>, transform_indices = @transform_2, window_bounds = array<i64: 32, 32>}, {pipeline_mode = #tpu.pipeline_mode<synchronous>, transform_indices = @transform_3, window_bounds = array<i64: 32, 32>}, {pipeline_mode = #tpu.pipeline_mode<synchronous>, transform_indices = @transform_4, window_bounds = array<i64: 2, 32>}, {pipeline_mode = #tpu.pipeline_mode<synchronous>, transform_indices = @transform_5, window_bounds = array<i64: 2, 32>}]} {
    %0 = tpu.iota {dimensions = array<i32: 1>} : vector<2x128xi32>
    %c0 = arith.constant 0 : index
    %c0_0 = arith.constant 0 : index
    %1 = vector.load %arg1[%c0, %c0_0] : memref<2x1xi32, #tpu.memory_space<vmem>>, vector<2x1xi32>
    %2 = vector.broadcast %1 : vector<2x1xi32> to vector<2x128xi32>
    %3 = arith.cmpi eq, %0, %2 : vector<2x128xi32>
    %4 = arith.extui %3 : vector<2x128xi1> to vector<2x128xi32>
    %5 = arith.sitofp %4 : vector<2x128xi32> to vector<2x128xf32>
    %c0_1 = arith.constant 0 : index
    %c0_2 = arith.constant 0 : index
    %6 = vector.load %arg2[%c0_1, %c0_2] : memref<128x32xf32, #tpu.memory_space<vmem>>, vector<128x32xf32>
    %cst = arith.constant dense<0.000000e+00> : vector<2x32xf32>
    %7 = tpu.matmul %5, %6, %cst {dimension_numbers = #tpu.dot_dimension_numbers<[1], [0], [0], [1], [0, 0, 1, 1], [], []>} : vector<2x128xf32>, vector<128x32xf32>, vector<2x32xf32> -> vector<2x32xf32>
    %c0_3 = arith.constant 0 : index
    %c0_4 = arith.constant 0 : index
    %8 = vector.load %arg3[%c0_3, %c0_4] : memref<32x32xf32, #tpu.memory_space<vmem>>, vector<32x32xf32>
    %cst_5 = arith.constant dense<0.000000e+00> : vector<2x32xf32>
    %9 = tpu.matmul %7, %8, %cst_5 {dimension_numbers = #tpu.dot_dimension_numbers<[1], [1], [0], [0], [0, 0, 1, 0], [], []>} : vector<2x32xf32>, vector<32x32xf32>, vector<2x32xf32> -> vector<2x32xf32>
    %c0_6 = arith.constant 0 : index
    %c0_7 = arith.constant 0 : index
    %10 = vector.load %arg5[%c0_6, %c0_7] : memref<2x32xf32, #tpu.memory_space<vmem>>, vector<1x32xf32>
    %11 = vector.broadcast %10 : vector<1x32xf32> to vector<2x32xf32>
    %12 = arith.addf %9, %11 : vector<2x32xf32>
    %13 = arith.negf %12 : vector<2x32xf32>
    %14 = math.exp %13 : vector<2x32xf32>
    %cst_8 = arith.constant 1.000000e+00 : f32
    %15 = vector.broadcast %cst_8 : f32 to vector<2x32xf32>
    %16 = arith.addf %15, %14 : vector<2x32xf32>
    %17 = arith.divf %15, %16 : vector<2x32xf32>
    %18 = arith.mulf %12, %17 : vector<2x32xf32>
    %c0_9 = arith.constant 0 : index
    %c0_10 = arith.constant 0 : index
    %19 = vector.load %arg4[%c0_9, %c0_10] : memref<32x32xf32, #tpu.memory_space<vmem>>, vector<32x32xf32>
    %cst_11 = arith.constant dense<0.000000e+00> : vector<2x32xf32>
    %20 = tpu.matmul %18, %19, %cst_11 {dimension_numbers = #tpu.dot_dimension_numbers<[1], [1], [0], [0], [0, 0, 1, 0], [], []>} : vector<2x32xf32>, vector<32x32xf32>, vector<2x32xf32> -> vector<2x32xf32>
    %c1 = arith.constant 1 : index
    %c0_12 = arith.constant 0 : index
    %21 = vector.load %arg5[%c1, %c0_12] : memref<2x32xf32, #tpu.memory_space<vmem>>, vector<1x32xf32>
    %22 = vector.broadcast %21 : vector<1x32xf32> to vector<2x32xf32>
    %23 = arith.addf %20, %22 : vector<2x32xf32>
    %c0_13 = arith.constant 0 : index
    %c0_14 = arith.constant 0 : index
    %24 = vector.load %arg6[%c0_13, %c0_14] : memref<2x32xf32, #tpu.memory_space<vmem>>, vector<2x32xf32>
    tpu.vector_store %arg6[%c0_13, %c0_14], %23 {strides = array<i32>} : memref<2x32xf32, #tpu.memory_space<vmem>>, vector<2x32xf32>,
    return
  }
  func.func @transform_0(%arg0: i32) -> (i32, i32) {
    %c0_i32 = arith.constant 0 : i32
    %c0_i32_0 = arith.constant 0 : i32
    %c0_i32_1 = arith.constant 0 : i32
    return %c0_i32, %c0_i32_0 : i32, i32
  }
  func.func @transform_1(%arg0: i32) -> (i32, i32) {
    %c0_i32 = arith.constant 0 : i32
    %c0_i32_0 = arith.constant 0 : i32
    %c0_i32_1 = arith.constant 0 : i32
    return %c0_i32, %c0_i32_0 : i32, i32
  }
  func.func @transform_2(%arg0: i32) -> (i32, i32) {
    %c0_i32 = arith.constant 0 : i32
    %c0_i32_0 = arith.constant 0 : i32
    %c0_i32_1 = arith.constant 0 : i32
    return %c0_i32, %c0_i32_0 : i32, i32
  }
  func.func @transform_3(%arg0: i32) -> (i32, i32) {
    %c0_i32 = arith.constant 0 : i32
    %c0_i32_0 = arith.constant 0 : i32
    %c0_i32_1 = arith.constant 0 : i32
    return %c0_i32, %c0_i32_0 : i32, i32
  }
  func.func @transform_4(%arg0: i32) -> (i32, i32) {
    %c0_i32 = arith.constant 0 : i32
    %c0_i32_0 = arith.constant 0 : i32
    %c0_i32_1 = arith.constant 0 : i32
    return %c0_i32, %c0_i32_0 : i32, i32
  }
  func.func @transform_5(%arg0: i32) -> (i32, i32) {
    %c0_i32 = arith.constant 0 : i32
    %c0_i32_0 = arith.constant 0 : i32
    %c0_i32_1 = arith.constant 0 : i32
    return %c0_i32, %c0_i32_0 : i32, i32
  }
}

</mosaic_0001>

<bundles_post_ra>
// kernel: timestep_embedder_forward.1
= control target key start
LH: loop header
LB: loop body
LE: loop exit
PB: predicated region body
PF: predicated region fallthrough
CT: control target
= control target key end

     0   :  { %v236_v3 = vmov 0   ;;  %s363_s0 = inlined_call_operand.vmem [shape: s32[2,1], index: 0, kind: input, shape index: {}]   ;;  %s364_s1 = inlined_call_operand.vmem [shape: f32[128,32], index: 1, kind: input, shape index: {}]   ;;  %s365_s2 = inlined_call_operand.vmem [shape: f32[32,32], index: 2, kind: input, shape index: {}]   ;;  %s366_s3 = inlined_call_operand.vmem [shape: f32[32,32], index: 3, kind: input, shape index: {}]   ;;  %s367_s4 = inlined_call_operand.vmem [shape: f32[2,32], index: 4, kind: input, shape index: {}]   ;;  %s368_s5 = inlined_call_operand.hbm [shape: f32[2,32], index: 5, kind: output, shape index: {}]  }
   0x1   :  { %v23_v0 = vld [vmem:[%s363_s0] sm:$0x3]  ;;  %v45_v1 = vld [vmem:[%s364_s1 + $0x78] sm:$0xff]  ;;  %v44_v2 = vld [vmem:[%s364_s1 + $0x70] sm:$0xff]  ;;  %203 = vset.pattern.permute.xlu0 %v236_v3 }
   0x2   :  { %46 = vmatpush.msra.mxu0 %v45_v1  ;;  %25 = vperm.xlu0 %203, %v23_v0   ;;  %v43_v4 = vld [vmem:[%s364_s1 + $0x68] sm:$0xff]  ;;  %v42_v5 = vld [vmem:[%s364_s1 + $0x60] sm:$0xff]  ;;  %v41_v6 = vld [vmem:[%s364_s1 + $0x58] sm:$0xff] }
   0x4   :  { %47 = vmatpush.msra.mxu0 %v44_v2 }
   0x6   :  { %48 = vmatpush.msra.mxu0 %v43_v4 }
   0x7   :  { %10 = vsyncpa [#allocation3], 0  ;;  %v40_v7 = vld [vmem:[%s364_s1 + $0x50] sm:$0xff]  ;;  %v39_v8 = vld [vmem:[%s364_s1 + $0x48] sm:$0xff]  ;;  %vm72_vm0 = vcmask 261120   ;;  %v21_v22 = vlaneseq  ;;  %v237_v25 = vmov 1.0  }
   0x8   :  { %49 = vmatpush.msra.mxu0 %v42_v5  ;;  %v38_v9 = vld [vmem:[%s364_s1 + $0x40] sm:$0xff]  ;;  %v37_v10 = vld [vmem:[%s364_s1 + $0x38] sm:$0xff]  ;;  %v36_v11 = vld [vmem:[%s364_s1 + $0x30] sm:$0xff]  ;;  %s238_s17 = smov [#allocation2]   ;;  %s178_s21 = sshll.u32 %s368_s5, 4  ;;  %vm169_vm6 = vcmask 254976   ;;  %s179_s21 = int_to_ptr.hbm [resolvable:$true] %s178_s21 }
   0x9   :  { %v35_v12 = vld [vmem:[%s364_s1 + $0x28] sm:$0xff]  ;;  %v34_v13 = vld [vmem:[%s364_s1 + $0x20] sm:$0xff]  ;;  %v33_v14 = vld [vmem:[%s364_s1 + $0x18] sm:$0xff]  ;;  %v22_v23 = vand.u32 127, %v21_v22  ;;  %s176_s18 = sshll.u32 %s238_s17, 4  ;;  %s177_s18 = int_to_ptr.vmem [resolvable:$true] %s176_s18 }
   0xa   :  { %50 = vmatpush.msra.mxu0 %v41_v6  ;;  %v32_v15 = vld [vmem:[%s364_s1 + $0x10] sm:$0xff]  ;;  %v31_v16 = vld [vmem:[%s364_s1 + $0x8] sm:$0xff]  ;;  %v30_v17 = vld [vmem:[%s364_s1] sm:$0xff] }
   0xb   :  { %v69_v18 = vld [vmem:[%s365_s2 + $0x18] sm:$0xff]  ;;  %v68_v19 = vld [vmem:[%s365_s2 + $0x10] sm:$0xff]  ;;  %v67_v20 = vld [vmem:[%s365_s2 + $0x8] sm:$0xff] }
   0xc   :  { %51 = vmatpush.msra.mxu0 %v40_v7  ;;  %189 = vmatpush.xpose.msk.msra.mxu1 %vm72_vm0, %v69_v18  ;;  %v66_v21 = vld [vmem:[%s365_s2] sm:$0xff]  ;;  %v131_v27 = vld [vmem:[%s366_s3 + $0x18] sm:$0xff]  ;;  %v130_v28 = vld [vmem:[%s366_s3 + $0x10] sm:$0xff] }
   0xd   :  { %195 = vmatpush.xpose.msk.msra.mxu2 %vm72_vm0, %v131_v27  ;;  %v129_v29 = vld [vmem:[%s366_s3 + $0x8] sm:$0xff]  ;;  %v204_v30 = vld [vmem:[%s367_s4] ss:$0 sm:$0xff]  ;;  %v205_v48 = vld [vmem:[%s367_s4 + $0x1] ss:$0 sm:$0xff] }
   0xe   :  { %52 = vmatpush.msra.mxu0 %v39_v8  ;;  %v128_v31 = vld [vmem:[%s366_s3] sm:$0xff] }
  0x10   :  { %53 = vmatpush.msra.mxu0 %v38_v9  ;;  %190 = vmatpush.xpose.msk.msra.mxu1 %vm72_vm0, %v68_v19 }
  0x11   :  { %196 = vmatpush.xpose.msk.msra.mxu2 %vm72_vm0, %v130_v28 }
  0x12   :  { %54 = vmatpush.msra.mxu0 %v37_v10 }
  0x14   :  { %55 = vmatpush.msra.mxu0 %v36_v11  ;;  %191 = vmatpush.xpose.msk.msra.mxu1 %vm72_vm0, %v67_v20 }
  0x15   :  { %197 = vmatpush.xpose.msk.msra.mxu2 %vm72_vm0, %v129_v29 }
  0x16   :  { %56 = vmatpush.msra.mxu0 %v35_v12 }
  0x18   :  { %57 = vmatpush.msra.mxu0 %v34_v13  ;;  %192 = vmatpush.xpose.msk.msra.mxu1 %vm72_vm0, %v66_v21 }
  0x19   :  { %198 = vmatpush.xpose.msk.msra.mxu2 %vm72_vm0, %v128_v31 }
  0x1a   :  { %58 = vmatpush.msra.mxu0 %v33_v14 }
  0x1c   :  { %59 = vmatpush.msra.mxu0 %v32_v15 }
  0x1e   :  { %60 = vmatpush.msra.mxu0 %v31_v16 }
  0x20   :  { %61 = vmatpush.msra.mxu0 %v30_v17 }
  0x74   :  { %v26_v24 = vpop.permute.xlu0 %25 }
  0x75   :  { %vm27_vm1 = vcmp.eq.s32.totalorder %v22_v23, %v26_v24 }
  0x76   :  { %188 = vmatmul.msk.f32.vlgmr.msra.gmra.mxu0 %vm27_vm1, %v237_v25 }
  0xf3   :  { %v63_v26 = vpop.f32.mrf.mxu0 }
  0xf4   :  { %193 = vmatmul.msk.f32.vlgmr.msra.gmra.mxu1 %vm72_vm0, %v63_v26 }
 0x171   :  { %v105_v32 = vpop.f32.mrf.mxu1 }
 0x172   :  { %v106_v33 = vadd.f32 %v204_v30, %v105_v32 }
 0x174   :  { %v194_v34 = vmul.f32 -1.442695, %v106_v33 }
 0x176   :  { %206 = vpow2.f32 %v194_v34 }
 0x17c   :  { %v207_v35 = vpop.eup %206 }
 0x17d   :  { %v111_v36 = vadd.f32 1.0, %v207_v35 }
 0x17f   :  { %208 = vrcp.f32 %v111_v36  ;;  %v123_v40 = vand.u32 2147483648, %v111_v36  ;;  %v121_v42 = vand.u32 2147483647, %v111_v36  ;;  %vm117_vm3 = vweird.f32 %v111_v36 }
 0x181   :  { %v124_v44 = vor.u32 1.1754944e-38, %v123_v40  ;;  %vm122_vm5 = vcmp.eq.f32.partialorder %v121_v42, 8.507059e+37 }
 0x185   :  { %v209_v37 = vpop.eup %208 }
 0x186   :  { %v113_v38 = vmul.f32 %v209_v37, %v111_v36  ;;  %vm118_vm2 = vweird.f32 %v209_v37 }
 0x187   :  { %vm119_vm4 = vmor %vm117_vm3, %vm118_vm2 }
 0x188   :  { %v114_v39 = vsub.f32 1.0, %v113_v38 }
 0x18a   :  { %v115_v41 = vmul.f32 %v209_v37, %v114_v39 }
 0x18c   :  { %v116_v43 = vadd.f32 %v209_v37, %v115_v41 }
 0x18e   :  { %v120_v45 = vsel %vm119_vm4, %v209_v37, %v116_v43 }
 0x18f   :  { %v125_v46 = vsel %vm122_vm5, %v124_v44, %v120_v45 }
 0x190   :  { %v127_v47 = vmul.f32 %v125_v46, %v106_v33 }
 0x192   :  { %199 = vmatmul.msk.f32.vlgmr.msra.gmra.mxu2 %vm72_vm0, %v127_v47 }
 0x215   :  { %v166_v49 = vpop.f32.mrf.mxu2 }
 0x216   :  { %v167_v50 = vadd.f32 %v205_v48, %v166_v49 }
 0x218   :  { %170 = vst.msk [vmem:[#allocation2] sm:$0x3] %vm169_vm6, %v167_v50 }
 0x219   :  { %181 = dma.vmem_to_hbm [thread:$0]  %s177_s18, 32, %s179_s21, [#allocation3]  }
 0x21a   :  { %234 = dma.done.wait [#allocation3], 32  }
 0x21b   :  { %235 = vsyncadd [#allocation3], 4294967264 }
 0x21c   :  { %186 = vsyncpa [#allocation3], 1 }

</bundles_post_ra>
